<compile_context>
chip_gen: v5e
topology: v5e:2x2
jax: 0.10.0
libtpu: 0.0.40
codegen_flags: <defaults>
</compile_context>

<pallas_src>
import functools

import jax
import jax.numpy as jnp
from jax.experimental import pallas as pl
from jax.experimental.pallas import tpu as pltpu

LANES = 128
TILE_BYTES = 4 * 1024 * 1024       # ~4 MiB per input tile (per perf review)
VMEM_LIMIT_BYTES = 32 * 1024 * 1024
MIN_KERNEL_ELEMENTS = 1 << 16      # below this a single fused XLA reduction wins


def _cdiv(a: int, b: int) -> int:
    return -(-a // b)


def _round_up(x: int, m: int) -> int:
    return _cdiv(x, m) * m


def _sublane(dtype) -> int:
    size = jnp.dtype(dtype).itemsize
    if size >= 4:
        return 8
    if size == 2:
        return 16
    return 32


def _fold(x, row_tile):
    """Reduce a (row_tile, 128) f32 tile into an (8, 128) slab.

    Uses several independent accumulation chains (when the tile is big enough)
    so the lowering is throughput-bound on the VALU slot rather than a single
    long dependent vadd chain (latency concern flagged for v7x).
    """
    blk = row_tile // 8
    x = x.reshape(blk, 8, LANES)
    nacc = 1
    for cand in (8, 4, 2):
        if blk % cand == 0 and blk >= 2 * cand:
            nacc = cand
            break
    if nacc > 1:
        x = x.reshape(nacc, blk // nacc, 8, LANES)
        return x.sum(axis=1).sum(axis=0)
    return x.sum(axis=0)


def _mse_partial_kernel(p_ref, t_ref, o_ref, *, rows, row_tile, inner_tiles,
                        num_tiles, need_mask):
    """Accumulates sum((p - t)^2) of this shard into an (8, 128) f32 slab."""
    i = pl.program_id(1)

    @pl.when(i == 0)
    def _():
        o_ref[...] = jnp.zeros_like(o_ref)

    d = p_ref[...].astype(jnp.float32) - t_ref[...].astype(jnp.float32)
    sq = d * d

    if need_mask:
        tile_idx = pl.program_id(0) * inner_tiles + i
        last = num_tiles - 1
        valid = rows - last * row_tile          # python int, 0 < valid < row_tile

        # Only the single straddling tile pays the mask (iota+cmp+select) cost.
        @pl.when(tile_idx == last)
        def _():
            r = jax.lax.broadcasted_iota(jnp.int32, (row_tile, LANES), 0)
            o_ref[...] += _fold(jnp.where(r < valid, sq, 0.0), row_tile)

        @pl.when(tile_idx != last)
        def _():
            o_ref[...] += _fold(sq, row_tile)
    else:
        o_ref[...] += _fold(sq, row_tile)


def reconstruction_loss(predicted: jax.Array, target: jax.Array, *,
                        min_kernel_elements: int = MIN_KERNEL_ELEMENTS,
                        tile_bytes: int = TILE_BYTES) -> jax.Array:
    """MSE loss with 'mean' reduction (matches nn.MSELoss(reduction='mean'))."""
    assert predicted.shape == target.shape, "predicted/target shapes must match"
    n = predicted.size

    def _xla_mse(p, t):
        return jnp.mean((p.astype(jnp.float32) - t.astype(jnp.float32)) ** 2)

    if n == 0 or n < min_kernel_elements:
        # Small (or empty) inputs: pallas_call launch + pipeline-fill overhead
        # loses to one fused XLA reduction.
        return _xla_mse(predicted, target)

    p = predicted.reshape(-1)
    t = target.reshape(-1)

    sub = max(_sublane(p.dtype), _sublane(t.dtype))
    chunk = sub * LANES

    # Aligned prefix goes through the kernel; the tiny ragged tail
    # (< sub*128 elements) is reduced in plain XLA — no full-tensor pad copy.
    aligned = (n // chunk) * chunk
    if aligned == 0:
        return _xla_mse(p, t)

    rows = aligned // LANES                       # multiple of `sub`
    p2 = p[:aligned].reshape(rows, LANES)
    t2 = t[:aligned].reshape(rows, LANES)

    # Byte-budgeted tile: ~tile_bytes per input tile (sized by the larger dtype).
    itemsize = max(jnp.dtype(p.dtype).itemsize, jnp.dtype(t.dtype).itemsize)
    target_rows = max(sub, (tile_bytes // (LANES * itemsize)) // sub * sub)

    if rows <= target_rows:
        row_tile, num_tiles, num_shards = rows, 1, 1
    else:
        num_tiles = _cdiv(rows, target_rows)
        num_tiles += num_tiles % 2                # prefer even -> clean 2-TC split
        row_tile = _round_up(_cdiv(rows, num_tiles), sub)
        num_tiles = _cdiv(rows, row_tile)         # actual tile count, no empty tiles
        # Only split across 2 shards when it is exact (no duplicate-tile DMA on
        # single-TC v5e/v6e; full coverage for v7x's 2 TensorCores).
        num_shards = 2 if (num_tiles % 2 == 0 and num_tiles >= 2) else 1
    inner_tiles = num_tiles // num_shards
    need_mask = (num_tiles * row_tile) != rows

    kernel = functools.partial(
        _mse_partial_kernel,
        rows=rows, row_tile=row_tile, inner_tiles=inner_tiles,
        num_tiles=num_tiles, need_mask=need_mask)

    def in_map(s, i):
        return (s * inner_tiles + i, 0)

    partials = pl.pallas_call(
        kernel,
        out_shape=jax.ShapeDtypeStruct((num_shards, 8, LANES), jnp.float32),
        grid=(num_shards, inner_tiles),
        in_specs=[
            pl.BlockSpec((row_tile, LANES), in_map),
            pl.BlockSpec((row_tile, LANES), in_map),
        ],
        out_specs=pl.BlockSpec((None, 8, LANES), lambda s, i: (s, 0, 0)),
        compiler_params=pltpu.CompilerParams(
            dimension_semantics=("parallel", "arbitrary"),
            vmem_limit_bytes=VMEM_LIMIT_BYTES),
    )(p2, t2)

    # Tiny final reduce (+ ragged tail) + mean normalization outside the kernel.
    total = jnp.sum(partials)
    if aligned != n:
        pt = p[aligned:].astype(jnp.float32)
        tt = t[aligned:].astype(jnp.float32)
        total = total + jnp.sum((pt - tt) ** 2)
    return total / n


# TODO(synk): only the module's default reduction='mean' is implemented
# ('sum'/'none' variants of nn.MSELoss are not exposed here).


if __name__ == "__main__":
    key = jax.random.PRNGKey(0)

    def _ref(p, t):
        return jnp.mean((p.astype(jnp.float32) - t.astype(jnp.float32)) ** 2)

    ok = True

    # 1) Canonical small diffusion-noise shape, forced through the kernel path.
    k1, k2, key = *jax.random.split(key, 2), key
    pred = jax.random.normal(k1, (2, 4, 16, 16), dtype=jnp.float32)
    targ = jax.random.normal(k2, (2, 4, 16, 16), dtype=jnp.float32)
    loss = reconstruction_loss(pred, targ, min_kernel_elements=0)
    jax.block_until_ready(loss)
    ok &= bool(jnp.allclose(loss, _ref(pred, targ), rtol=1e-5, atol=1e-6))

    # 2) Same shape via the default dispatch (small-size XLA fallback).
    loss_fb = reconstruction_loss(pred, targ)
    jax.block_until_ready(loss_fb)
    ok &= bool(jnp.allclose(loss_fb, _ref(pred, targ), rtol=1e-5, atol=1e-6))

    # 3) Larger shape: multiple tiles, exact even split (2 shards), no mask.
    k1, k2, key = *jax.random.split(key, 2), key
    pred_l = jax.random.normal(k1, (8, 4, 96, 128), dtype=jnp.float32)
    targ_l = jax.random.normal(k2, (8, 4, 96, 128), dtype=jnp.float32)
    loss_l = reconstruction_loss(pred_l, targ_l, min_kernel_elements=0,
                                 tile_bytes=256 * 1024)
    jax.block_until_ready(loss_l)
    ok &= bool(jnp.allclose(loss_l, _ref(pred_l, targ_l), rtol=1e-5, atol=1e-6))

    # 4) Native bf16 inputs (no wrapper upcast; cast happens in-kernel).
    pred_b = pred_l.astype(jnp.bfloat16)
    targ_b = targ_l.astype(jnp.bfloat16)
    loss_b = reconstruction_loss(pred_b, targ_b)
    jax.block_until_ready(loss_b)
    ok &= bool(jnp.allclose(loss_b, _ref(pred_b, targ_b), rtol=1e-4, atol=1e-5))

    # 5) Ragged, non-lane-aligned size forced through the kernel (XLA tail path).
    k1, k2, key = *jax.random.split(key, 2), key
    pred_r = jax.random.normal(k1, (3, 5, 7, 11), dtype=jnp.float32)
    targ_r = jax.random.normal(k2, (3, 5, 7, 11), dtype=jnp.float32)
    loss_r = reconstruction_loss(pred_r, targ_r, min_kernel_elements=0)
    jax.block_until_ready(loss_r)
    ok &= bool(jnp.allclose(loss_r, _ref(pred_r, targ_r), rtol=1e-5, atol=1e-6))

    # 6) Row count not divisible by the tile: exercises the pl.when-gated
    #    straddling-tile mask with a 2-shard split.
    k1, k2, key = *jax.random.split(key, 2), key
    pred_m = jax.random.normal(k1, (1992, 128), dtype=jnp.float32)
    targ_m = jax.random.normal(k2, (1992, 128), dtype=jnp.float32)
    loss_m = reconstruction_loss(pred_m, targ_m, min_kernel_elements=0,
                                 tile_bytes=512 * 128 * 4)
    jax.block_until_ready(loss_m)
    ok &= bool(jnp.allclose(loss_m, _ref(pred_m, targ_m), rtol=1e-5, atol=1e-6))

    assert ok, "mismatch vs plain-JAX MSE reference"
    print("KERNEL_OK")
</pallas_src>

<mosaic_0001>
module attributes {stable_mosaic.version = 11 : i64} {
  func.func @_mse_partial_kernel(%arg0: i32, %arg1: i32, %arg2: memref<16x128xf32, #tpu.memory_space<vmem>>, %arg3: memref<16x128xf32, #tpu.memory_space<vmem>>, %arg4: memref<1x8x128xf32, #tpu.memory_space<vmem>>) attributes {dimension_semantics = [#tpu.dimension_semantics<parallel>, #tpu.dimension_semantics<arbitrary>], iteration_bounds = array<i64: 1, 1>, scalar_prefetch = 0 : i64, scratch_operands = 0 : i64, tpu.core_type = #tpu.core_type<tc>, window_params = [{transform_indices = @transform_0, window_bounds = array<i64: 16, 128>}, {transform_indices = @transform_1, window_bounds = array<i64: 16, 128>}, {transform_indices = @transform_2, window_bounds = array<i64: 1, 8, 128>}]} {
    %c0_i32 = arith.constant 0 : i32
    %0 = arith.cmpi eq, %arg1, %c0_i32 : i32
    %1 = arith.extui %0 : i1 to i32
    %c0_i32_0 = arith.constant 0 : i32
    %2 = arith.cmpi ne, %1, %c0_i32_0 : i32
    scf.if %2 {
      %cst_10 = arith.constant 0.000000e+00 : f32
      %15 = vector.broadcast %cst_10 : f32 to vector<8x128xf32>
      %c0_11 = arith.constant 0 : index
      %c0_12 = arith.constant 0 : index
      %c0_13 = arith.constant 0 : index
      %16 = vector.load %arg4[%c0_11, %c0_12, %c0_13] : memref<1x8x128xf32, #tpu.memory_space<vmem>>, vector<1x8x128xf32>
      %17 = vector.shape_cast %16 : vector<1x8x128xf32> to vector<8x128xf32>
      %18 = vector.shape_cast %15 : vector<8x128xf32> to vector<1x8x128xf32>
      tpu.vector_store %arg4[%c0_11, %c0_12, %c0_13], %18 {strides = array<i32>} : memref<1x8x128xf32, #tpu.memory_space<vmem>>, vector<1x8x128xf32>,
    } else {
    }
    %c0 = arith.constant 0 : index
    %c0_1 = arith.constant 0 : index
    %3 = vector.load %arg2[%c0, %c0_1] : memref<16x128xf32, #tpu.memory_space<vmem>>, vector<16x128xf32>
    %c0_2 = arith.constant 0 : index
    %c0_3 = arith.constant 0 : index
    %4 = vector.load %arg3[%c0_2, %c0_3] : memref<16x128xf32, #tpu.memory_space<vmem>>, vector<16x128xf32>
    %5 = arith.subf %3, %4 : vector<16x128xf32>
    %6 = arith.mulf %5, %5 : vector<16x128xf32>
    %c0_4 = arith.constant 0 : index
    %c0_5 = arith.constant 0 : index
    %c0_6 = arith.constant 0 : index
    %7 = vector.load %arg4[%c0_4, %c0_5, %c0_6] : memref<1x8x128xf32, #tpu.memory_space<vmem>>, vector<1x8x128xf32>
    %8 = vector.shape_cast %7 : vector<1x8x128xf32> to vector<8x128xf32>
    %9 = vector.shape_cast %6 : vector<16x128xf32> to vector<2x8x128xf32>
    %cst = arith.constant dense<0.000000e+00> : vector<8x128xf32>
    %10 = vector.multi_reduction <add>, %9, %cst [0] : vector<2x8x128xf32> to vector<8x128xf32>
    %11 = arith.addf %8, %10 : vector<8x128xf32>
    %c0_7 = arith.constant 0 : index
    %c0_8 = arith.constant 0 : index
    %c0_9 = arith.constant 0 : index
    %12 = vector.load %arg4[%c0_7, %c0_8, %c0_9] : memref<1x8x128xf32, #tpu.memory_space<vmem>>, vector<1x8x128xf32>
    %13 = vector.shape_cast %12 : vector<1x8x128xf32> to vector<8x128xf32>
    %14 = vector.shape_cast %11 : vector<8x128xf32> to vector<1x8x128xf32>
    tpu.vector_store %arg4[%c0_7, %c0_8, %c0_9], %14 {strides = array<i32>} : memref<1x8x128xf32, #tpu.memory_space<vmem>>, vector<1x8x128xf32>,
    return
  }
  func.func @transform_0(%arg0: i32, %arg1: i32) -> (i32, i32) {
    %c1_i32 = arith.constant 1 : i32
    %0 = arith.muli %arg0, %c1_i32 : i32
    %1 = arith.addi %0, %arg1 : i32
    %c0_i32 = arith.constant 0 : i32
    %c0_i32_0 = arith.constant 0 : i32
    return %1, %c0_i32 : i32, i32
  }
  func.func @transform_1(%arg0: i32, %arg1: i32) -> (i32, i32) {
    %c1_i32 = arith.constant 1 : i32
    %0 = arith.muli %arg0, %c1_i32 : i32
    %1 = arith.addi %0, %arg1 : i32
    %c0_i32 = arith.constant 0 : i32
    %c0_i32_0 = arith.constant 0 : i32
    return %1, %c0_i32 : i32, i32
  }
  func.func @transform_2(%arg0: i32, %arg1: i32) -> (i32, i32, i32) {
    %c0_i32 = arith.constant 0 : i32
    %c0_i32_0 = arith.constant 0 : i32
    %c0_i32_1 = arith.constant 0 : i32
    return %arg0, %c0_i32, %c0_i32_0 : i32, i32, i32
  }
}

</mosaic_0001>

<bundles_post_ra>
// kernel: tpu_custom_call.1
= control target key start
LH: loop header
LB: loop body
LE: loop exit
PB: predicated region body
PF: predicated region fallthrough
CT: control target
= control target key end

     0   :  { %7 = vsyncpa [#allocation3], 0  ;;  %s204_s0 = inlined_call_operand.hbm [shape: f32[16,128], index: 0, kind: input, shape index: {}]   ;;  %s205_s1 = inlined_call_operand.hbm [shape: f32[16,128], index: 1, kind: input, shape index: {}]   ;;  %s206_s2 = inlined_call_operand.hbm [shape: f32[1,8,128], index: 2, kind: output, shape index: {}]  }
   0x1   :  { %8 = vsyncpa [#allocation6], 0 }
   0x2   :  { %9 = vsyncpa [#allocation4], 0  ;;  %s18_s11 = sshll.u32 %s204_s0, 4  ;;  %s175_s12 = smov [#allocation2]   ;;  %s19_s11 = int_to_ptr.hbm [resolvable:$true] %s18_s11 }
   0x3   :  { %s20_s13 = sshll.u32 %s175_s12, 4  ;;  %s35_s16 = sshll.u32 %s205_s1, 4  ;;  %s21_s13 = int_to_ptr.vmem [resolvable:$true] %s20_s13  ;;  %s36_s16 = int_to_ptr.hbm [resolvable:$true] %s35_s16 }
   0x4   :  { %s176_s17 = smov 128   ;;  %s177_s18 = smov 8  }
   0x5   :  { %26 = dma.hbm_to_vmem [thread:$0]  %s19_s11, 256, %s21_s13, [#allocation3], %s176_s17, %s176_s17, %s177_s18  }
   0x6   :  { %s178_s19 = smov [#allocation5]  }
   0x7   :  { %s37_s20 = sshll.u32 %s178_s19, 4  ;;  %s38_s20 = int_to_ptr.vmem [resolvable:$true] %s37_s20 }
   0x8   :  { %43 = dma.hbm_to_vmem [thread:$0]  %s36_s16, 256, %s38_s20, [#allocation6], %s176_s17, %s176_s17, %s177_s18  }
   0x9   :  { %169 = dma.done.wait [#allocation3], 256  }
   0xa   :  { %170 = vsyncadd [#allocation3], 4294967040 }
   0xb   :  { %171 = dma.done.wait [#allocation6], 256  }
   0xc   :  { %172 = vsyncadd [#allocation6], 4294967040  ;;  %v61_v0 = vld [vmem:[#allocation2] sm:$0xff]  ;;  %v62_v1 = vld [vmem:[#allocation2 + $0x8] sm:$0xff]  ;;  %s179_s0 = smov [#allocation7]   ;;  %s80_s23 = sshll.u32 %s206_s2, 4  ;;  %s81_s23 = int_to_ptr.hbm [resolvable:$true] %s80_s23 }
   0xd   :  { %v63_v2 = vld [vmem:[#allocation5] sm:$0xff]  ;;  %v64_v3 = vld [vmem:[#allocation5 + $0x8] sm:$0xff]  ;;  %s78_s1 = sshll.u32 %s179_s0, 4  ;;  %s79_s1 = int_to_ptr.vmem [resolvable:$true] %s78_s1 }
   0xe   :  { %v65_v4 = vsub.f32 %v61_v0, %v63_v2  ;;  %v66_v5 = vsub.f32 %v62_v1, %v64_v3 }
  0x10   :  { %v67_v6 = vmul.f32 %v65_v4, %v65_v4  ;;  %v68_v7 = vmul.f32 %v66_v5, %v66_v5 }
  0x12   :  { %v70_v8 = vadd.f32 %v68_v7, %v67_v6 }
  0x14   :  { %72 = vst [vmem:[#allocation7] sm:$0xff] %v70_v8 }
  0x15   :  { %83 = dma.vmem_to_hbm [thread:$0]  %s79_s1, 128, %s81_s23, [#allocation4]  }
  0x16   :  { %173 = dma.done.wait [#allocation4], 128  }
  0x17   :  { %174 = vsyncadd [#allocation4], 4294967168 }
  0x18   :  { %88 = vsyncpa [#allocation3], 1 }
  0x19   :  { %89 = vsyncpa [#allocation6], 1 }
  0x1a   :  { %90 = vsyncpa [#allocation4], 1 }

</bundles_post_ra>
